<compile_context>
chip_gen: v5e
topology: v5e:2x2
jax: 0.10.0
libtpu: 0.0.40
codegen_flags: <defaults>
</compile_context>

<pallas_src>
import functools

import jax
import jax.numpy as jnp
from jax.experimental import pallas as pl
from jax.experimental.pallas import tpu as pltpu

EPS = 1e-5


# ---------------------------------------------------------------------------
# Chip-aware sizing
# ---------------------------------------------------------------------------
def _chip_config():
    """Return (target_block_bytes, vmem_limit_bytes), chip aware.

    v5e/v6e: 128 MiB physical VMEM -> ~8 MiB blocks, 64 MiB scoped limit.
    v7x:      64 MiB physical VMEM -> ~4 MiB blocks, ~48 MiB scoped limit
    (headroom for double buffers, outputs and compiler-internal scratch).
    """
    vmem_cap = 128 * 1024 * 1024
    try:
        vmem_cap = int(pltpu.get_tpu_info().vmem_capacity_bytes)
    except Exception:
        pass
    if vmem_cap >= 100 * 1024 * 1024:          # v5e / v6e
        return 8 * 1024 * 1024, 64 * 1024 * 1024
    return 4 * 1024 * 1024, int(vmem_cap * 3 // 4)   # v7x (~48 MiB)


def _choose_tiling(B, S, F, itemsize, target_block_bytes):
    """Native-layout tiling: block = (b_blk, S_or_T, f_blk), grid = (n_b, n_f).

    * If one per-batch slab fits the budget we keep the full feature axis and
      fold as many batch elements as fit into one block (amortizes the ~0.35us
      per-grid-step overhead when F is small).
    * If the feature axis alone blows the budget we tile it in multiples of
      128 lanes (one batch per block).  Ragged tails are masked by Pallas.
    * The grid is forced to >= 2 steps when possible so v7x's 2 TensorCores
      can both be used and the pipeline actually overlaps DMA with compute.
    """
    per_batch = S * F * itemsize
    if F > 128 and per_batch > target_block_bytes:
        lane_budget = target_block_bytes // (S * itemsize)
        f_blk = max(128, (lane_budget // 128) * 128)
        f_blk = min(f_blk, (F // 128) * 128)
        b_blk = 1
    else:
        # Note: if S*F*itemsize alone exceeds the budget (huge S, narrow F) we
        # still keep the whole sequence resident -- the statistics need all of
        # S in one block.
        f_blk = F
        b_blk = max(1, min(B, target_block_bytes // max(per_batch, 1)))

    n_b = pl.cdiv(B, b_blk)
    n_f = pl.cdiv(F, f_blk)

    if n_b * n_f == 1:  # keep both v7x TensorCores busy when we can
        if B >= 2:
            b_blk = pl.cdiv(B, 2)
            n_b = pl.cdiv(B, b_blk)
        elif F >= 256:
            f_blk = max(128, pl.cdiv(pl.cdiv(F, 2), 128) * 128)
            n_f = pl.cdiv(F, f_blk)

    return b_blk, f_blk, (n_b, n_f)


# ---------------------------------------------------------------------------
# Kernels
# ---------------------------------------------------------------------------
def _norm_kernel(params_ref, x_ref, y_ref, stats_ref, *, seq_len, tail, head, strip):
    """x block: (b_blk, S, f_blk).  Stats over axis 1 (sublane), then normalize
    the window x[:, S-tail-head : S-head, :]."""
    S = seq_len
    bb, _, cc = x_ref.shape
    inv_s = jnp.float32(1.0 / S)

    n_strips = S // strip
    rem = S - n_strips * strip
    unroll = min(n_strips, 8) if n_strips > 0 else 1

    # ---- pass 1: sum -> mean (strip-wise reads straight from the ref) ----
    def sum_body(i, acc):
        r = pl.multiple_of(i * strip, strip)
        xs = x_ref[:, pl.ds(r, strip), :].astype(jnp.float32)
        return acc + jnp.sum(xs, axis=1, keepdims=True)

    s1 = jnp.zeros((bb, 1, cc), jnp.float32)
    if n_strips > 0:
        s1 = jax.lax.fori_loop(0, n_strips, sum_body, s1, unroll=unroll)
    if rem > 0:
        xs = x_ref[:, S - rem:, :].astype(jnp.float32)
        s1 = s1 + jnp.sum(xs, axis=1, keepdims=True)
    mean = s1 * inv_s

    # ---- pass 2: centered sum of squares (two-pass variance, ddof=0) ----
    def ssq_body(i, acc):
        r = pl.multiple_of(i * strip, strip)
        d = x_ref[:, pl.ds(r, strip), :].astype(jnp.float32) - mean
        return acc + jnp.sum(d * d, axis=1, keepdims=True)

    s2 = jnp.zeros((bb, 1, cc), jnp.float32)
    if n_strips > 0:
        s2 = jax.lax.fori_loop(0, n_strips, ssq_body, s2, unroll=unroll)
    if rem > 0:
        d = x_ref[:, S - rem:, :].astype(jnp.float32) - mean
        s2 = s2 + jnp.sum(d * d, axis=1, keepdims=True)
    var = jnp.maximum(s2 * inv_s, 0.0)

    rstd = jax.lax.rsqrt(var + EPS)          # single EUP rsqrt per column
    stdev = (var + EPS) * rstd               # sqrt(v) = v * rsqrt(v): reuse it

    w = params_ref[0]                        # affine_weight (SMEM scalar)
    b = params_ref[1]                        # affine_bias   (SMEM scalar)

    # Window is a static slice of the *ref* (free), not of a loaded value.
    x_win = x_ref[:, S - tail - head: S - head, :].astype(jnp.float32)
    y_ref[...] = ((x_win - mean) * (rstd * w) + b).astype(y_ref.dtype)

    # Packed stats output [mean; stdev]: two direct sub-row stores, no concat.
    stats_ref[:, 0:1, :] = mean.astype(stats_ref.dtype)
    stats_ref[:, 1:2, :] = stdev.astype(stats_ref.dtype)


def _denorm_kernel(params_ref, y_ref, mean_ref, std_ref, x_ref):
    """y block: (b_blk, T, f_blk); mean/std blocks: (b_blk, 1, f_blk)."""
    w_old = params_ref[0]
    b_old = params_ref[1]
    inv_w = 1.0 / (w_old + jnp.float32(EPS * EPS))    # hoisted scalar reciprocal

    scale = std_ref[...].astype(jnp.float32) * inv_w   # (bb, 1, cc)
    shift = mean_ref[...].astype(jnp.float32)          # (bb, 1, cc)
    y = y_ref[...].astype(jnp.float32)
    x_ref[...] = ((y - b_old) * scale + shift).astype(x_ref.dtype)


# ---------------------------------------------------------------------------
# Wrappers
# ---------------------------------------------------------------------------
def revin_norm(x, affine_weight, affine_bias, *, tail, head):
    """mode='norm'. x: (B,S,F). Returns (y (B,tail,F), mean (B,1,F), stdev (B,1,F))."""
    B, S, F = x.shape
    assert head >= 1 and tail + head <= S, "window x[:, -tail-head:-head] must be valid"

    target_block, vmem_limit = _chip_config()
    b_blk, f_blk, grid = _choose_tiling(B, S, F, x.dtype.itemsize, target_block)
    strip = 16 if x.dtype.itemsize < 4 else 8

    params = jnp.stack([jnp.asarray(affine_weight, jnp.float32).reshape(()),
                        jnp.asarray(affine_bias, jnp.float32).reshape(())])  # (2,) SMEM

    kernel = functools.partial(_norm_kernel, seq_len=S, tail=tail, head=head, strip=strip)

    y, stats = pl.pallas_call(
        kernel,
        out_shape=(
            jax.ShapeDtypeStruct((B, tail, F), x.dtype),
            jax.ShapeDtypeStruct((B, 2, F), jnp.float32),     # packed [mean; stdev]
        ),
        grid=grid,
        in_specs=[
            pl.BlockSpec(memory_space=pltpu.MemorySpace.SMEM),            # params
            pl.BlockSpec((b_blk, S, f_blk), lambda i, j: (i, 0, j)),      # x (native)
        ],
        out_specs=(
            pl.BlockSpec((b_blk, tail, f_blk), lambda i, j: (i, 0, j)),   # y
            pl.BlockSpec((b_blk, 2, f_blk), lambda i, j: (i, 0, j)),      # stats
        ),
        compiler_params=pltpu.CompilerParams(
            dimension_semantics=("parallel", "parallel"),
            vmem_limit_bytes=vmem_limit,
        ),
    )(params, x)

    mean = stats[:, 0:1, :]      # tiny (B,1,F) slices -- negligible vs. x traffic
    stdev = stats[:, 1:2, :]
    return y, mean, stdev


def revin_denorm(y, mean, stdev, affine_weight_old, affine_bias_old):
    """mode='denorm'. y: (B,T,F); mean/stdev: (B,1,F) from the 'norm' pass."""
    B, T, F = y.shape
    target_block, vmem_limit = _chip_config()
    b_blk, f_blk, grid = _choose_tiling(B, T, F, y.dtype.itemsize, target_block)

    params = jnp.stack([jnp.asarray(affine_weight_old, jnp.float32).reshape(()),
                        jnp.asarray(affine_bias_old, jnp.float32).reshape(())])

    x = pl.pallas_call(
        _denorm_kernel,
        out_shape=jax.ShapeDtypeStruct((B, T, F), y.dtype),
        grid=grid,
        in_specs=[
            pl.BlockSpec(memory_space=pltpu.MemorySpace.SMEM),            # params
            pl.BlockSpec((b_blk, T, f_blk), lambda i, j: (i, 0, j)),      # y
            pl.BlockSpec((b_blk, 1, f_blk), lambda i, j: (i, 0, j)),      # mean
            pl.BlockSpec((b_blk, 1, f_blk), lambda i, j: (i, 0, j)),      # stdev
        ],
        out_specs=pl.BlockSpec((b_blk, T, f_blk), lambda i, j: (i, 0, j)),
        compiler_params=pltpu.CompilerParams(
            dimension_semantics=("parallel", "parallel"),
            vmem_limit_bytes=vmem_limit,
        ),
    )(params, y, mean, stdev)
    return x


# ---------------------------------------------------------------------------
# Pure-JAX reference (mirrors the PyTorch module)
# ---------------------------------------------------------------------------
def ref_norm(x, w, b, tail, head):
    S = x.shape[1]
    mean = jnp.mean(x, axis=1, keepdims=True)
    var = jnp.var(x, axis=1, keepdims=True)          # ddof=0 == unbiased=False
    stdev = jnp.sqrt(var + EPS)
    xw = x[:, S - tail - head: S - head]
    y = ((xw - mean) / stdev) * w + b
    return y, mean, stdev


def ref_denorm(y, mean, stdev, w_old, b_old):
    x = (y - b_old) / (w_old + EPS * EPS)
    return x * stdev + mean


def _check_case(key, B, S, F, tail, head):
    x = jax.random.normal(key, (B, S, F), dtype=jnp.float32) * 2.0 + 0.5
    # nn.Parameter(torch.ones(1)) / nn.Parameter(torch.zeros(1))
    w = jnp.ones((), jnp.float32)
    b = jnp.zeros((), jnp.float32)

    y, mean, stdev = revin_norm(x, w, b, tail=tail, head=head)
    jax.block_until_ready((y, mean, stdev))
    y_ref, mean_ref, stdev_ref = ref_norm(x, w, b, tail, head)
    assert jnp.allclose(y, y_ref, atol=1e-5, rtol=1e-5)
    assert jnp.allclose(mean, mean_ref, atol=1e-5, rtol=1e-5)
    assert jnp.allclose(stdev, stdev_ref, atol=1e-5, rtol=1e-5)

    # denorm uses the snapshotted affine params (the module's *_old values).
    x_rec = jax.block_until_ready(revin_denorm(y, mean, stdev, w, b))
    x_rec_ref = ref_denorm(y_ref, mean_ref, stdev_ref, w, b)
    assert jnp.allclose(x_rec, x_rec_ref, atol=1e-5, rtol=1e-5)
    # Round trip recovers the window (up to the eps^2 perturbation of the weight).
    assert jnp.allclose(x_rec, x[:, S - tail - head: S - head], atol=1e-3, rtol=1e-3)


# ---------------------------------------------------------------------------
if __name__ == "__main__":
    key = jax.random.PRNGKey(0)
    k0, k1 = jax.random.split(key)

    # Small case: B=2, S=16, F=8, window tail=8 head=4 (grid split over batch).
    _check_case(k0, B=2, S=16, F=8, tail=8, head=4)

    # Wider-feature case: exercises the 128-lane feature tiling / megacore split.
    _check_case(k1, B=1, S=32, F=256, tail=16, head=8)

    print("KERNEL_OK")
</pallas_src>

<mosaic_0001>
module attributes {stable_mosaic.version = 11 : i64} {
  func.func @_norm_kernel(%arg0: i32, %arg1: i32, %arg2: memref<2xf32, #tpu.memory_space<smem>>, %arg3: memref<1x16x8xf32, #tpu.memory_space<vmem>>, %arg4: memref<1x8x8xf32, #tpu.memory_space<vmem>>, %arg5: memref<1x2x8xf32, #tpu.memory_space<vmem>>) attributes {dimension_semantics = [#tpu.dimension_semantics<parallel>, #tpu.dimension_semantics<parallel>], iteration_bounds = array<i64: 2, 1>, scalar_prefetch = 0 : i64, scratch_operands = 0 : i64, tpu.core_type = #tpu.core_type<tc>, window_params = [{transform_indices = @transform_0, window_bounds = array<i64: 2>}, {transform_indices = @transform_1, window_bounds = array<i64: 1, 16, 8>}, {transform_indices = @transform_2, window_bounds = array<i64: 1, 8, 8>}, {transform_indices = @transform_3, window_bounds = array<i64: 1, 2, 8>}]} {
    %cst = arith.constant 0.000000e+00 : f32
    %0 = vector.broadcast %cst : f32 to vector<1x1x8xf32>
    %c0_i32 = arith.constant 0 : i32
    %c8_i32 = arith.constant 8 : i32
    %1 = arith.muli %c0_i32, %c8_i32 : i32
    %2 = tpu.assume_multiple %1, 8 : i32
    %c0 = arith.constant 0 : index
    %3 = arith.index_cast %2 : i32 to index
    %c0_0 = arith.constant 0 : index
    %4 = vector.load %arg3[%c0, %3, %c0_0] : memref<1x16x8xf32, #tpu.memory_space<vmem>>, vector<1x8x8xf32>
    %cst_1 = arith.constant dense<0.000000e+00> : vector<1x8xf32>
    %5 = vector.multi_reduction <add>, %4, %cst_1 [1] : vector<1x8x8xf32> to vector<1x8xf32>
    %6 = vector.shape_cast %5 : vector<1x8xf32> to vector<1x1x8xf32>
    %7 = arith.addf %0, %6 : vector<1x1x8xf32>
    %c1_i32 = arith.constant 1 : i32
    %c8_i32_2 = arith.constant 8 : i32
    %8 = arith.muli %c1_i32, %c8_i32_2 : i32
    %9 = tpu.assume_multiple %8, 8 : i32
    %c0_3 = arith.constant 0 : index
    %10 = arith.index_cast %9 : i32 to index
    %c0_4 = arith.constant 0 : index
    %11 = vector.load %arg3[%c0_3, %10, %c0_4] : memref<1x16x8xf32, #tpu.memory_space<vmem>>, vector<1x8x8xf32>
    %cst_5 = arith.constant dense<0.000000e+00> : vector<1x8xf32>
    %12 = vector.multi_reduction <add>, %11, %cst_5 [1] : vector<1x8x8xf32> to vector<1x8xf32>
    %13 = vector.shape_cast %12 : vector<1x8xf32> to vector<1x1x8xf32>
    %14 = arith.addf %7, %13 : vector<1x1x8xf32>
    %c2_i32 = arith.constant 2 : i32
    %cst_6 = arith.constant 6.250000e-02 : f32
    %15 = vector.broadcast %cst_6 : f32 to vector<1x1x8xf32>
    %16 = arith.mulf %14, %15 : vector<1x1x8xf32>
    %cst_7 = arith.constant 0.000000e+00 : f32
    %17 = vector.broadcast %cst_7 : f32 to vector<1x1x8xf32>
    %c0_i32_8 = arith.constant 0 : i32
    %c8_i32_9 = arith.constant 8 : i32
    %18 = arith.muli %c0_i32_8, %c8_i32_9 : i32
    %19 = tpu.assume_multiple %18, 8 : i32
    %c0_10 = arith.constant 0 : index
    %20 = arith.index_cast %19 : i32 to index
    %c0_11 = arith.constant 0 : index
    %21 = vector.load %arg3[%c0_10, %20, %c0_11] : memref<1x16x8xf32, #tpu.memory_space<vmem>>, vector<1x8x8xf32>
    %22 = vector.broadcast %16 : vector<1x1x8xf32> to vector<1x8x8xf32>
    %23 = arith.subf %21, %22 : vector<1x8x8xf32>
    %24 = arith.mulf %23, %23 : vector<1x8x8xf32>
    %cst_12 = arith.constant dense<0.000000e+00> : vector<1x8xf32>
    %25 = vector.multi_reduction <add>, %24, %cst_12 [1] : vector<1x8x8xf32> to vector<1x8xf32>
    %26 = vector.shape_cast %25 : vector<1x8xf32> to vector<1x1x8xf32>
    %27 = arith.addf %17, %26 : vector<1x1x8xf32>
    %c1_i32_13 = arith.constant 1 : i32
    %c8_i32_14 = arith.constant 8 : i32
    %28 = arith.muli %c1_i32_13, %c8_i32_14 : i32
    %29 = tpu.assume_multiple %28, 8 : i32
    %c0_15 = arith.constant 0 : index
    %30 = arith.index_cast %29 : i32 to index
    %c0_16 = arith.constant 0 : index
    %31 = vector.load %arg3[%c0_15, %30, %c0_16] : memref<1x16x8xf32, #tpu.memory_space<vmem>>, vector<1x8x8xf32>
    %32 = vector.broadcast %16 : vector<1x1x8xf32> to vector<1x8x8xf32>
    %33 = arith.subf %31, %32 : vector<1x8x8xf32>
    %34 = arith.mulf %33, %33 : vector<1x8x8xf32>
    %cst_17 = arith.constant dense<0.000000e+00> : vector<1x8xf32>
    %35 = vector.multi_reduction <add>, %34, %cst_17 [1] : vector<1x8x8xf32> to vector<1x8xf32>
    %36 = vector.shape_cast %35 : vector<1x8xf32> to vector<1x1x8xf32>
    %37 = arith.addf %27, %36 : vector<1x1x8xf32>
    %c2_i32_18 = arith.constant 2 : i32
    %cst_19 = arith.constant 6.250000e-02 : f32
    %38 = vector.broadcast %cst_19 : f32 to vector<1x1x8xf32>
    %39 = arith.mulf %37, %38 : vector<1x1x8xf32>
    %cst_20 = arith.constant 0.000000e+00 : f32
    %40 = vector.broadcast %cst_20 : f32 to vector<1x1x8xf32>
    %41 = arith.maximumf %39, %40 : vector<1x1x8xf32>
    %cst_21 = arith.constant 9.99999974E-6 : f32
    %42 = vector.broadcast %cst_21 : f32 to vector<1x1x8xf32>
    %43 = arith.addf %41, %42 : vector<1x1x8xf32>
    %44 = math.rsqrt %43 : vector<1x1x8xf32>
    %cst_22 = arith.constant 9.99999974E-6 : f32
    %45 = vector.broadcast %cst_22 : f32 to vector<1x1x8xf32>
    %46 = arith.addf %41, %45 : vector<1x1x8xf32>
    %47 = arith.mulf %46, %44 : vector<1x1x8xf32>
    %c0_23 = arith.constant 0 : index
    %48 = memref.load %arg2[%c0_23] : memref<2xf32, #tpu.memory_space<smem>>
    %c1 = arith.constant 1 : index
    %49 = memref.load %arg2[%c1] : memref<2xf32, #tpu.memory_space<smem>>
    %c0_24 = arith.constant 0 : index
    %c4 = arith.constant 4 : index
    %c0_25 = arith.constant 0 : index
    %50 = vector.load %arg3[%c0_24, %c4, %c0_25] : memref<1x16x8xf32, #tpu.memory_space<vmem>>, vector<1x8x8xf32>
    %51 = vector.broadcast %16 : vector<1x1x8xf32> to vector<1x8x8xf32>
    %52 = arith.subf %50, %51 : vector<1x8x8xf32>
    %53 = vector.broadcast %48 : f32 to vector<1x1x8xf32>
    %54 = arith.mulf %44, %53 : vector<1x1x8xf32>
    %55 = vector.broadcast %54 : vector<1x1x8xf32> to vector<1x8x8xf32>
    %56 = arith.mulf %52, %55 : vector<1x8x8xf32>
    %57 = vector.broadcast %49 : f32 to vector<1x8x8xf32>
    %58 = arith.addf %56, %57 : vector<1x8x8xf32>
    %c0_26 = arith.constant 0 : index
    %c0_27 = arith.constant 0 : index
    %c0_28 = arith.constant 0 : index
    %59 = vector.load %arg4[%c0_26, %c0_27, %c0_28] : memref<1x8x8xf32, #tpu.memory_space<vmem>>, vector<1x8x8xf32>
    tpu.vector_store %arg4[%c0_26, %c0_27, %c0_28], %58 {strides = array<i32>} : memref<1x8x8xf32, #tpu.memory_space<vmem>>, vector<1x8x8xf32>,
    %c0_29 = arith.constant 0 : index
    %c0_30 = arith.constant 0 : index
    %c0_31 = arith.constant 0 : index
    %60 = vector.load %arg5[%c0_29, %c0_30, %c0_31] : memref<1x2x8xf32, #tpu.memory_space<vmem>>, vector<1x1x8xf32>
    tpu.vector_store %arg5[%c0_29, %c0_30, %c0_31], %16 {strides = array<i32>} : memref<1x2x8xf32, #tpu.memory_space<vmem>>, vector<1x1x8xf32>,
    %c0_32 = arith.constant 0 : index
    %c1_33 = arith.constant 1 : index
    %c0_34 = arith.constant 0 : index
    %61 = vector.load %arg5[%c0_32, %c1_33, %c0_34] : memref<1x2x8xf32, #tpu.memory_space<vmem>>, vector<1x1x8xf32>
    tpu.vector_store %arg5[%c0_32, %c1_33, %c0_34], %47 {strides = array<i32>} : memref<1x2x8xf32, #tpu.memory_space<vmem>>, vector<1x1x8xf32>,
    return
  }
  func.func @transform_0(%arg0: i32, %arg1: i32) -> i32 {
    %c0_i32 = arith.constant 0 : i32
    %c0_i32_0 = arith.constant 0 : i32
    return %c0_i32 : i32
  }
  func.func @transform_1(%arg0: i32, %arg1: i32) -> (i32, i32, i32) {
    %c0_i32 = arith.constant 0 : i32
    %c0_i32_0 = arith.constant 0 : i32
    return %arg0, %c0_i32, %arg1 : i32, i32, i32
  }
  func.func @transform_2(%arg0: i32, %arg1: i32) -> (i32, i32, i32) {
    %c0_i32 = arith.constant 0 : i32
    %c0_i32_0 = arith.constant 0 : i32
    return %arg0, %c0_i32, %arg1 : i32, i32, i32
  }
  func.func @transform_3(%arg0: i32, %arg1: i32) -> (i32, i32, i32) {
    %c0_i32 = arith.constant 0 : i32
    %c0_i32_0 = arith.constant 0 : i32
    return %arg0, %c0_i32, %arg1 : i32, i32, i32
  }
}

</mosaic_0001>

<bundles_post_ra>
// kernel: tpu_custom_call.1
= control target key start
LH: loop header
LB: loop body
LE: loop exit
PB: predicated region body
PF: predicated region fallthrough
CT: control target
= control target key end

     0   :  { %9 = vsyncpa [#allocation4], 0  ;;  %s834_s0 = inlined_call_operand.vmem [shape: f32[2], index: 0, kind: input, shape index: {}]   ;;  %s835_s1 = inlined_call_operand.vmem [shape: f32[2,16,8], index: 1, kind: input, shape index: {}]   ;;  %s836_s2 = inlined_call_operand.hbm [shape: f32[2,8,8], index: 2, kind: output, shape index: {0}]   ;;  %s837_s3 = inlined_call_operand.hbm [shape: f32[2,2,8], index: 3, kind: output, shape index: {1}]  }
   0x1   :  { %10 = vsyncpa [#allocation3], 0 }
   0x2   :  { %12 = vsyncpa [#allocation3 + $0x1], 0 }
   0x3   :  { %13 = vsyncpa [#allocation7], 0 }
   0x4   :  { %15 = vsyncpa [#allocation7 + $0x1], 0  ;;  %s691_s12 = smov 0   ;;  %s693_s13 = smov 0  }
   0x5   :  { %s695_s14 = smov 0   ;;  %s697_s15 = smov 0  }
   0x6   :  { %s699_s16 = smov 0   ;;  %s701_s17 = smov 0  }
   0x7 LB: > { %s446_s18 = sadd.s32 4294967295, %s668_s17   ;;  %s447_s19 = sadd.s32 4294967294, %s668_s17   ;;  %s668_s17 = sphi %s701_s17, %s21_s17   ;;  %s664_s16 = sphi %s699_s16, %s844_s16   ;;  %s660_s15 = sphi %s697_s15, %s843_s15   ;;  %s656_s14 = sphi %s695_s14, %s842_s14   ;;  %s652_s13 = sphi %s693_s13, %s841_s13   ;;  %s648_s12 = sphi %s691_s12, %s840_s12  }
   0x8   : > { %s33_s20 = sadd.s32 1, %s664_s16  ;;  %s91_s21 = sadd.s32 1, %s656_s14 }
   0x9   : > { %p35_p0 = scmp.ge.s32.totalorder %s33_s20, 2  ;;  %p101_p1 = scmp.ne.s32.totalorder %s656_s14, %s652_s13 }
   0xa   : > { %p102_p2 = scmp.eq.s32.totalorder %s446_s18, 1  ;;  %p107_p3 = scmp.ne.s32.totalorder %s652_s13, %s648_s12 }
   0xb   : > { %s846_s20 = smov (%p35_p0, %s33_s20), 0  ;;  %p108_p5 = scmp.eq.s32.totalorder %s447_s19, 1 }
   0xc   : > { %p731_p4 = por %p102_p2, %p101_p1  ;;  %s86_s23 = ssub.s32 %s664_s16, %s846_s20 }
   0xd   : > { %p448_p6 = scmp.ge.s32.totalorder %s668_s17, 1  ;;  %p89_p7 = scmp.eq.s32.totalorder %s86_s23, 0 }
   0xe   : > { %p738_p8 = por %p108_p5, %p107_p3  ;;  %p143_p9 = scmp.lt.s32.totalorder %s668_s17, 3 }
   0xf   : > { %s744_s25 = scalar_select %p89_p7, %s656_s14, %s91_s21  }
  0x10   : > { %p144_p10 = pnand %p448_p6, %p143_p9  ;;  %p485_p11 = scmp.eq.s32.totalorder %s446_s18, 0 }
  0x11   : > { %s155_s28 = sshll.u32 %s834_s0, 4  ;;  %s670_s29 = smov [#allocation2]   ;;  %s156_s28 = int_to_ptr.vmem [resolvable:$true] %s155_s28 }
  0x12   : > { %p474_p12 = pneg %p144_p10  ;;  %179 = sbr.rel (%p144_p10) target bundleno = 110 (0x6e), region = 28 }
  0x14   : > { %p475_p13 = pnand %p485_p11, %p474_p12 }
  0x16   : > { %477 = dma.vmem_to_smem (!%p475_p13), %s156_s28, 16, %s670_s29, [#allocation4]  }
  0x17   : > { %635 = dma.done.wait (%p485_p11), [#allocation4], 16  }
  0x18   : > { %637 = vsyncadd (%p485_p11), [#allocation4], 4294967280 }
  0x19   : > { %186 = sfence }
  0x1a   : > { %p213_p0 = scmp.lt.s32.totalorder %s660_s15, 1  ;;  %vm222_vm0 = vcmask 64512   ;;  %s763_s8 = sand.u32 1, %s652_s13   ;;  %vm286_vm1 = vcmask 57344  }
  0x1b   : > { %s454_s9 = sshll.u32 %s763_s8, 1  ;;  %s276_s11 = sld [smem:[#allocation2]] }
  0x1c   : > { %s214_s30 = scalar_select %p213_p0, %s660_s15, 1 }
  0x1d   : > { %s766_s10 = scalar_lea.vmem [#allocation6], %s454_s9  ;;  %s462_s18 = sshll.u32 %s660_s15, 1 }
  0x1e   : > { %s465_s4 = sshll.u32 %s214_s30, 4  ;;  %s453_s19 = sshll.u32 %s763_s8, 3 }
  0x1f   : > { %s754_s7 = scalar_lea.vmem %s835_s1, %s465_s4  ;;  %s772_s21 = sld [smem:[#allocation2 + $0x1]] }
  0x20   : > { %v221_v0 = vld [vmem:[%s754_s7] sm:$0xff]  ;;  %v457_v1 = vld [vmem:[%s754_s7 + $0x8] sm:$0xff]  ;;  %s321_s27 = scalar_lea.hbm %s837_s3, %s462_s18  ;;  %s461_s28 = sshll.u32 %s660_s15, 3 }
  0x21   : > { %v223_v2 = vsel %vm222_vm0, %v221_v0, 0.0  ;;  %v233_v3 = vsel %vm222_vm0, %v457_v1, 0.0  ;;  %v278_v45 = vld [vmem:[%s754_s7 + $0x4] sm:$0xff]  ;;  %s323_s29 = sshll.u32 %s766_s10, 4  ;;  %v280_v47 = vstv %s276_s11  ;;  %s325_s30 = sshll.u32 %s321_s27, 4  ;;  %s324_s29 = int_to_ptr.vmem [resolvable:$true] %s323_s29  ;;  %s326_s30 = int_to_ptr.hbm [resolvable:$true] %s325_s30 }
  0x22   : > { %v224_v4 = vrot.slane %v223_v2, 4  ;;  %v234_v5 = vrot.slane %v233_v3, 4  ;;  %s306_s6 = scalar_lea.hbm %s836_s2, %s461_s28  ;;  %s205_s9 = scalar_lea.vmem [#allocation5], %s453_s19 }
  0x23   : > { %s308_s18 = sshll.u32 %s205_s9, 4  ;;  %s310_s15 = sshll.u32 %s306_s6, 4  ;;  %s784_s18 = int_to_ptr.vmem [resolvable:$true] %s308_s18  ;;  %s311_s15 = int_to_ptr.hbm [resolvable:$true] %s310_s15 }
  0x24   : > { %v225_v6 = vadd.f32 %v224_v4, %v223_v2  ;;  %v235_v7 = vadd.f32 %v234_v5, %v233_v3  ;;  %s295_s7 = scalar_lea.sflag [#allocation7], %s763_s8  ;;  %s568_s11 = sshra.s32 %s326_s30, 4  ;;  %s569_s11 = int_to_ptr.hbm [resolvable:$true] %s568_s11 }
  0x25   : > { %v283_v52 = vstv %s772_s21  ;;  %s570_s23 = scalar_lea.hbm %s569_s11, 2  ;;  %s574_s27 = scalar_lea.hbm %s837_s3, 4 }
  0x26   : > { %v226_v8 = vrot.slane %v225_v6, 2  ;;  %v236_v9 = vrot.slane %v235_v7, 2  ;;  %p571_p1 = scmp.ne.s32.totalorder %s569_s11, %s570_s23  ;;  %p575_p5 = scmp.lt.s32.totalorder %s569_s11, %s837_s3 }
  0x27   : > { %p576_p6 = scmp.lt.s32.totalorder %s574_s27, %s570_s23 }
  0x28   : > { %v227_v10 = vadd.f32 %v226_v8, %v225_v6  ;;  %v237_v11 = vadd.f32 %v236_v9, %v235_v7  ;;  %p572_p2 = pnand %p571_p1, %p731_p4 }
  0x29   : > { %p577_p7 = por %p576_p6, %p575_p5 }
  0x2a   : > { %v228_v12 = vrot.slane %v227_v10, 1  ;;  %v238_v13 = vrot.slane %v237_v11, 1  ;;  %p573_p3 = pneg %p572_p2 }
  0x2c   : > { %v229_v14 = vadd.f32 %v228_v12, %v227_v10  ;;  %v239_v15 = vadd.f32 %v238_v13, %v237_v11  ;;  %p578_p9 = pnand %p577_p7, %p573_p3 }
  0x2e   : > { %v240_v16 = vadd.f32 %v239_v15, %v229_v14 }
  0x30   : > { %v241_v17 = vmul.f32 0.0625, %v240_v16 }
  0x32   : > { %v242_v18 = vsub.f32 %v221_v0, %v241_v17  ;;  %v252_v19 = vsub.f32 %v457_v1, %v241_v17  ;;  %287 = vst.msk [vmem:[%s766_s10] sm:$0x1] %vm286_vm1, %v241_v17  ;;  %v279_v48 = vsub.f32 %v278_v45, %v241_v17 }
  0x34   : > { %v243_v20 = vmul.f32 %v242_v18, %v242_v18  ;;  %v253_v21 = vmul.f32 %v252_v19, %v252_v19 }
  0x36   : > { %v244_v22 = vsel %vm222_vm0, %v243_v20, 0.0  ;;  %v254_v23 = vsel %vm222_vm0, %v253_v21, 0.0 }
  0x37   : > { %v245_v24 = vrot.slane %v244_v22, 4  ;;  %v255_v25 = vrot.slane %v254_v23, 4 }
  0x39   : > { %v246_v26 = vadd.f32 %v245_v24, %v244_v22  ;;  %v256_v27 = vadd.f32 %v255_v25, %v254_v23 }
  0x3b   : > { %v247_v28 = vrot.slane %v246_v26, 2  ;;  %v257_v29 = vrot.slane %v256_v27, 2 }
  0x3d   : > { %v248_v30 = vadd.f32 %v247_v28, %v246_v26  ;;  %v258_v31 = vadd.f32 %v257_v29, %v256_v27 }
  0x3f   : > { %v249_v32 = vrot.slane %v248_v30, 1  ;;  %v259_v33 = vrot.slane %v258_v31, 1 }
  0x41   : > { %v250_v34 = vadd.f32 %v249_v32, %v248_v30  ;;  %v260_v35 = vadd.f32 %v259_v33, %v258_v31 }
  0x43   : > { %v261_v36 = vadd.f32 %v260_v35, %v250_v34 }
  0x45   : > { %v262_v37 = vmul.f32 0.0625, %v261_v36 }
  0x47   : > { %v263_v38 = vmax.f32 %v262_v37, 0.0 }
  0x49   : > { %v264_v39 = vadd.f32 1e-05, %v263_v38 }
  0x4b   : > { %537 = vrsqrt.f32 %v264_v39  ;;  %vm271_vm2 = vweird.f32 %v264_v39 }
  0x51   : > { %v538_v40 = vpop.eup %537 }
  0x52   : > { %v266_v41 = vmul.f32 %v538_v40, %v264_v39  ;;  %vm272_vm3 = vweird.f32 %v538_v40 }
  0x53   : > { %vm273_vm4 = vmor %vm271_vm2, %vm272_vm3 }
  0x54   : > { %v267_v42 = vmul.f32 %v538_v40, %v266_v41 }
  0x56   : > { %v268_v43 = vmul.f32 0.5, %v267_v42 }
  0x58   : > { %v269_v44 = vsub.f32 1.5, %v268_v43 }
  0x5a   : > { %v270_v46 = vmul.f32 %v538_v40, %v269_v44 }
  0x5c   : > { %v274_v49 = vsel %vm273_vm4, %v538_v40, %v270_v46 }
  0x5d   : > { %v281_v50 = vmul.f32 %v280_v47, %v274_v49  ;;  %v275_v51 = vmul.f32 %v274_v49, %v264_v39 }
  0x5f   : > { %v282_v53 = vmul.f32 %v281_v50, %v279_v48  ;;  %288 = vst.msk [vmem:[%s766_s10 + $0x1] sm:$0x1] %vm286_vm1, %v275_v51 }
  0x60   : > { %581 = shalt.err (!%p578_p9)
}
  0x61   : > { %471 = dma.vmem_to_hbm [thread:$0]  (%p731_p4), %s324_s29, 32, %s326_s30, %s295_s7   ;;  %v284_v54 = vadd.f32 %v283_v52, %v282_v53 }
  0x62   : > { %s290_s10 = scalar_lea.sflag [#allocation3], %s763_s8  ;;  %s596_s4 = sshra.s32 %s311_s15, 4  ;;  %s597_s4 = int_to_ptr.hbm [resolvable:$true] %s596_s4 }
  0x63   : > { %285 = vst.msk [vmem:[%s205_s9] sm:$0xff] %vm222_vm0, %v284_v54  ;;  %s598_s5 = scalar_lea.hbm %s597_s4, 8  ;;  %s602_s23 = scalar_lea.hbm %s836_s2, 16 }
  0x64   : > { %p599_p10 = scmp.ne.s32.totalorder %s597_s4, %s598_s5  ;;  %p603_p13 = scmp.lt.s32.totalorder %s597_s4, %s836_s2 }
  0x65   : > { %p604_p0 = scmp.lt.s32.totalorder %s602_s23, %s598_s5 }
  0x66   : > { %p600_p11 = pnand %p599_p10, %p731_p4 }
  0x67   : > { %p605_p1 = por %p604_p0, %p603_p13 }
  0x68   : > { %p601_p12 = pneg %p600_p11 }
  0x6a   : > { %p606_p2 = pnand %p605_p1, %p601_p12 }
  0x6c   : > { %609 = shalt.err (!%p606_p2)
}
  0x6d   : > { %470 = dma.vmem_to_hbm [thread:$0]  (%p731_p4), %s784_s18, 128, %s311_s15, %s290_s10  }
  0x6e PF: > { %p487_p3 = scmp.ge.s32.totalorder %s668_s17, 2  ;;  %s337_s8 = sand.u32 1, %s648_s12  }
  0x6f   : > { %s338_s29 = scalar_lea.sflag [#allocation3], %s337_s8 }
  0x70   : > { %p479_p5 = pnand %p487_p3, %p738_p8 }
  0x72   : > { %p480_p6 = pneg %p479_p5 }
  0x74   : > { %639 = dma.done.wait (%p480_p6), %s338_s29, 128  }
  0x75   : > { %641 = vsyncadd (%p480_p6), %s338_s29, 4294967168  ;;  %s348_s30 = scalar_lea.sflag [#allocation7], %s337_s8 }
  0x76   : > { %643 = dma.done.wait (%p480_p6), %s348_s30, 32  }
  0x77   : > { %645 = vsyncadd (%p480_p6), %s348_s30, 4294967264  ;;  %s21_s17 = sadd.s32 1, %s668_s17   ;;  %s840_s12 = smov %s652_s13 }
  0x78   : > { %p18_p7 = scmp.ge.s32.totalorder %s21_s17, 4   ;;  %s841_s13 = smov %s656_s14 }
  0x79   : > { %s842_s14 = smov %s744_s25  ;;  %s843_s15 = smov %s664_s16 }
  0x7a   : > { %s844_s16 = smov %s846_s20  ;;  %20 = sbr.rel (!%p18_p7) target bundleno = 7 (0x7), region = 86 }
  0x7f   :  { %354 = vsyncpa [#allocation3], 1 }
  0x80   :  { %356 = vsyncpa [#allocation3 + $0x1], 1 }
  0x81   :  { %357 = vsyncpa [#allocation7], 1 }
  0x82   :  { %359 = vsyncpa [#allocation7 + $0x1], 1 }
  0x83   :  { %360 = vsyncpa [#allocation4], 1 }
  0x84   :  { %362 = vsyncpa [#allocation4 + $0x1], 1 }

</bundles_post_ra>
